<compile_context>
chip_gen: v6e
topology: v6e:2x2x1
jax: 0.10.0
libtpu: 0.0.40
codegen_flags: <defaults>
</compile_context>

<pallas_src>
import functools

import jax
import jax.numpy as jnp
from jax.experimental import pallas as pl
from jax.experimental.pallas import tpu as pltpu


def _round_up(x, m):
    return ((x + m - 1) // m) * m


def _vmem_capacity_bytes():
    try:
        info = pltpu.get_tpu_info()
        cap = getattr(info, "vmem_capacity_bytes", None)
        if cap:
            return int(cap)
    except Exception:
        pass
    return 128 * 1024 * 1024


def _ce_label_smooth_kernel(logits_ref, targets_ref, out_ref,
                            m_sc, s_sc, wx_sc, *,
                            epsilon, num_classes, block_c, ragged_c):
    # logits_ref: (TB, TC) native dtype; targets_ref: (TB, 1) int32
    # out_ref:    (TB, 1) f32 per-row loss (written on the last class tile)
    # scratch:    m_sc / s_sc / wx_sc all (TB, 1) f32, carried across class tiles.
    ci = pl.program_id(1)

    @pl.when(ci == 0)
    def _():
        m_sc[...] = jnp.full_like(m_sc, -jnp.inf)
        s_sc[...] = jnp.zeros_like(s_sc)
        wx_sc[...] = jnp.zeros_like(wx_sc)

    x = logits_ref[...].astype(jnp.float32)          # cast in VMEM, not in HBM
    t = targets_ref[...]                              # (TB, 1) int32
    tb, tc = x.shape

    # Smoothed-target weights without materializing a one-hot tensor.
    col = ci * block_c + jax.lax.broadcasted_iota(jnp.int32, (tb, tc), 1)
    on = 1.0 - epsilon + epsilon / num_classes
    off = epsilon / num_classes
    w = jnp.where(col == t, on, off)

    if ragged_c:
        # Last class tile extends past C: mask garbage columns out of max/exp/sum.
        valid = col < num_classes
        x_m = jnp.where(valid, x, -jnp.inf)
        x_w = jnp.where(valid, x, 0.0)
        w = jnp.where(valid, w, 0.0)
    else:
        x_m = x
        x_w = x

    # Online logsumexp update (lane reductions -> XLU; exp -> EUP).
    m_prev = m_sc[...]
    m_new = jnp.maximum(m_prev, jnp.max(x_m, axis=-1, keepdims=True))
    alpha = jnp.exp(m_prev - m_new)
    s_sc[...] = alpha * s_sc[...] + jnp.sum(jnp.exp(x_m - m_new), axis=-1,
                                            keepdims=True)
    # Fused weighted reduction: one pass, no separate sum_z / z_t.
    wx_sc[...] = wx_sc[...] + jnp.sum(w * x_w, axis=-1, keepdims=True)
    m_sc[...] = m_new

    @pl.when(ci == pl.num_programs(1) - 1)
    def _():
        # row_loss = lse(x) - sum_c w_c * x_c   (sum(w) == 1)
        out_ref[...] = m_sc[...] + jnp.log(s_sc[...]) - wx_sc[...]


def cross_entropy_label_smooth(logits, targets, epsilon=0.1,
                               block_batch=None, block_classes=None):
    """Pallas equivalent of CrossEntropyLabelSmooth.forward (forward_v1).

    logits:  (B, C) float array (kept in its native dtype, e.g. bf16 or f32)
    targets: (B,)   integer class labels
    """
    B, C = logits.shape
    itemsize = jnp.dtype(logits.dtype).itemsize
    mult = max(8, 32 // itemsize)               # sublane pack: 8 f32 / 16 bf16 / 32 i8

    # --- per-generation VMEM budgets ---
    phys = _vmem_capacity_bytes()
    small_vmem = phys <= (64 << 20)             # v7x-class TensorCore
    budget_f32 = (4 << 20) if small_vmem else (12 << 20)   # f32 working set / block
    limit_cap = min(phys - (16 << 20), 100 << 20)

    # --- class tiling decision ---
    if block_classes is not None:
        bc = int(block_classes)
        block_c = C if bc >= C else max(128, (bc // 128) * 128)
    elif mult * C * 4 <= budget_f32:
        block_c = C                              # whole class axis in one block
    else:
        block_c = 0                              # decide after tb (class-tiled path)

    # --- batch tile (rows) ---
    if block_batch is not None:
        tb = int(block_batch)
    elif block_c == C:
        tb = max(mult, budget_f32 // max(4 * C, 1))
    else:
        tb = 128                                 # modest rows, wide class blocks
    tb = min(tb, _round_up(B, mult))
    tb = max(mult, (tb // mult) * mult)

    if block_c == 0:
        bc = (budget_f32 // (4 * tb)) // 128 * 128
        block_c = C if bc >= C else max(128, bc)

    ragged_c = (C % block_c) != 0
    nb = pl.cdiv(B, tb)
    nc = pl.cdiv(C, block_c)

    targets2 = targets.astype(jnp.int32).reshape(B, 1)

    # --- VMEM limit: double-buffered input + f32 intermediates + headroom ---
    in_bytes = tb * block_c * itemsize
    f32_bytes = tb * block_c * 4
    vmem_limit = int(min(limit_cap,
                         max(32 << 20, 2 * in_bytes + 4 * f32_bytes + (4 << 20))))

    kernel = functools.partial(
        _ce_label_smooth_kernel,
        epsilon=float(epsilon),
        num_classes=int(C),
        block_c=int(block_c),
        ragged_c=bool(ragged_c),
    )

    row_losses = pl.pallas_call(
        kernel,
        out_shape=jax.ShapeDtypeStruct((B, 1), jnp.float32),
        grid_spec=pltpu.PrefetchScalarGridSpec(
            num_scalar_prefetch=0,
            grid=(nb, nc),
            in_specs=[
                pl.BlockSpec((tb, block_c), lambda i, j: (i, j)),   # logits tile
                pl.BlockSpec((tb, 1), lambda i, j: (i, 0)),         # targets tile
            ],
            out_specs=pl.BlockSpec((tb, 1), lambda i, j: (i, 0)),
            scratch_shapes=[
                pltpu.VMEM((tb, 1), jnp.float32),   # running max
                pltpu.VMEM((tb, 1), jnp.float32),   # running sum of exp
                pltpu.VMEM((tb, 1), jnp.float32),   # running weighted sum
            ],
        ),
        compiler_params=pltpu.CompilerParams(
            dimension_semantics=("parallel", "arbitrary"),
            vmem_limit_bytes=vmem_limit,
        ),
    )(logits, targets2)

    # Tiny final reduction in JAX; mean over the real batch.
    return jnp.sum(row_losses[:, 0]) / B


if __name__ == "__main__":
    key = jax.random.PRNGKey(0)
    k1, k2, k3, k4, k5, k6, k7, k8 = jax.random.split(key, 8)

    def reference(logits, targets, epsilon=0.1):
        C = logits.shape[1]
        log_probs = jax.nn.log_softmax(logits.astype(jnp.float32), axis=1)
        onehot = jax.nn.one_hot(targets, C, dtype=jnp.float32)
        smooth = (1.0 - epsilon) * onehot + epsilon / C
        return jnp.sum(jnp.mean(-smooth * log_probs, axis=0))

    # Case 1: tiny shapes matching the module's own test (B=2, C=5), f32 logits.
    B, C = 2, 5
    x = jax.random.normal(k1, (B, C), dtype=jnp.float32)
    t = jax.random.randint(k2, (B,), 0, C, dtype=jnp.int32)
    got = jax.block_until_ready(cross_entropy_label_smooth(x, t, epsilon=0.1))
    want = reference(x, t, epsilon=0.1)
    assert jnp.allclose(got, want, rtol=1e-5, atol=1e-5), (got, want)

    # Case 2: bf16 logits streamed natively, num_classes=1000, un-aligned batch.
    B, C = 6, 1000
    xb = jax.random.normal(k3, (B, C), dtype=jnp.bfloat16)
    tb_ = jax.random.randint(k4, (B,), 0, C, dtype=jnp.int32)
    got = jax.block_until_ready(cross_entropy_label_smooth(xb, tb_, epsilon=0.1))
    want = reference(xb.astype(jnp.float32), tb_, epsilon=0.1)
    assert jnp.allclose(got, want, rtol=1e-5, atol=1e-5), (got, want)

    # Case 3: force the class-tiled online-logsumexp path (exact class tiling).
    B, C = 10, 384
    x = jax.random.normal(k5, (B, C), dtype=jnp.float32)
    t = jax.random.randint(k6, (B,), 0, C, dtype=jnp.int32)
    got = jax.block_until_ready(
        cross_entropy_label_smooth(x, t, epsilon=0.1, block_batch=8, block_classes=128))
    want = reference(x, t, epsilon=0.1)
    assert jnp.allclose(got, want, rtol=1e-5, atol=1e-5), (got, want)

    # Case 4: class-tiled path with a ragged last class block (C % block_classes != 0).
    B, C = 7, 200
    x = jax.random.normal(k7, (B, C), dtype=jnp.float32)
    t = jax.random.randint(k8, (B,), 0, C, dtype=jnp.int32)
    got = jax.block_until_ready(
        cross_entropy_label_smooth(x, t, epsilon=0.1, block_batch=8, block_classes=128))
    want = reference(x, t, epsilon=0.1)
    assert jnp.allclose(got, want, rtol=1e-5, atol=1e-5), (got, want)

    print("KERNEL_OK")
</pallas_src>

<mosaic_0001>
module attributes {stable_mosaic.version = 11 : i64} {
  func.func @_ce_label_smooth_kernel(%arg0: i32, %arg1: i32, %arg2: memref<8x5xf32, #tpu.memory_space<vmem>>, %arg3: memref<8x1xi32, #tpu.memory_space<vmem>>, %arg4: memref<8x1xf32, #tpu.memory_space<vmem>>, %arg5: memref<8x1xf32, #tpu.memory_space<vmem>>, %arg6: memref<8x1xf32, #tpu.memory_space<vmem>>, %arg7: memref<8x1xf32, #tpu.memory_space<vmem>>) attributes {dimension_semantics = [#tpu.dimension_semantics<parallel>, #tpu.dimension_semantics<arbitrary>], iteration_bounds = array<i64: 1, 1>, scalar_prefetch = 0 : i64, scratch_operands = 3 : i64, tpu.core_type = #tpu.core_type<tc>, window_params = [{transform_indices = @transform_0, window_bounds = array<i64: 8, 5>}, {transform_indices = @transform_1, window_bounds = array<i64: 8, 1>}, {transform_indices = @transform_2, window_bounds = array<i64: 8, 1>}]} {
    %c0_i32 = arith.constant 0 : i32
    %0 = arith.cmpi eq, %arg1, %c0_i32 : i32
    %1 = arith.extui %0 : i1 to i32
    %c0_i32_0 = arith.constant 0 : i32
    %2 = arith.cmpi ne, %1, %c0_i32_0 : i32
    scf.if %2 {
      %cst_22 = arith.constant 0xFF800000 : f32
      %39 = vector.broadcast %cst_22 : f32 to vector<8x1xf32>
      %c0_23 = arith.constant 0 : index
      %c0_24 = arith.constant 0 : index
      %40 = vector.load %arg5[%c0_23, %c0_24] : memref<8x1xf32, #tpu.memory_space<vmem>>, vector<8x1xf32>
      tpu.vector_store %arg5[%c0_23, %c0_24], %39 {strides = array<i32>} : memref<8x1xf32, #tpu.memory_space<vmem>>, vector<8x1xf32>,
      %cst_25 = arith.constant 0.000000e+00 : f32
      %41 = vector.broadcast %cst_25 : f32 to vector<8x1xf32>
      %c0_26 = arith.constant 0 : index
      %c0_27 = arith.constant 0 : index
      %42 = vector.load %arg6[%c0_26, %c0_27] : memref<8x1xf32, #tpu.memory_space<vmem>>, vector<8x1xf32>
      tpu.vector_store %arg6[%c0_26, %c0_27], %41 {strides = array<i32>} : memref<8x1xf32, #tpu.memory_space<vmem>>, vector<8x1xf32>,
      %cst_28 = arith.constant 0.000000e+00 : f32
      %43 = vector.broadcast %cst_28 : f32 to vector<8x1xf32>
      %c0_29 = arith.constant 0 : index
      %c0_30 = arith.constant 0 : index
      %44 = vector.load %arg7[%c0_29, %c0_30] : memref<8x1xf32, #tpu.memory_space<vmem>>, vector<8x1xf32>
      tpu.vector_store %arg7[%c0_29, %c0_30], %43 {strides = array<i32>} : memref<8x1xf32, #tpu.memory_space<vmem>>, vector<8x1xf32>,
    } else {
    }
    %c0 = arith.constant 0 : index
    %c0_1 = arith.constant 0 : index
    %3 = vector.load %arg2[%c0, %c0_1] : memref<8x5xf32, #tpu.memory_space<vmem>>, vector<8x5xf32>
    %c0_2 = arith.constant 0 : index
    %c0_3 = arith.constant 0 : index
    %4 = vector.load %arg3[%c0_2, %c0_3] : memref<8x1xi32, #tpu.memory_space<vmem>>, vector<8x1xi32>
    %c5_i32 = arith.constant 5 : i32
    %5 = arith.muli %arg1, %c5_i32 : i32
    %6 = tpu.iota {dimensions = array<i32: 1>} : vector<8x5xi32>
    %7 = vector.broadcast %5 : i32 to vector<8x5xi32>
    %8 = arith.addi %7, %6 : vector<8x5xi32>
    %9 = vector.broadcast %4 : vector<8x1xi32> to vector<8x5xi32>
    %10 = arith.cmpi eq, %8, %9 : vector<8x5xi32>
    %cst = arith.constant 9.200000e-01 : f32
    %cst_4 = arith.constant 2.000000e-02 : f32
    %11 = vector.broadcast %cst : f32 to vector<8x5xf32>
    %12 = vector.broadcast %cst_4 : f32 to vector<8x5xf32>
    %13 = arith.select %10, %11, %12 : vector<8x5xi1>, vector<8x5xf32>
    %c0_5 = arith.constant 0 : index
    %c0_6 = arith.constant 0 : index
    %14 = vector.load %arg5[%c0_5, %c0_6] : memref<8x1xf32, #tpu.memory_space<vmem>>, vector<8x1xf32>
    %cst_7 = arith.constant dense<0xFF800000> : vector<8xf32>
    %15 = vector.multi_reduction <maximumf>, %3, %cst_7 [1] : vector<8x5xf32> to vector<8xf32>
    %16 = vector.shape_cast %15 : vector<8xf32> to vector<8x1xf32>
    %17 = arith.maximumf %14, %16 : vector<8x1xf32>
    %18 = arith.subf %14, %17 : vector<8x1xf32>
    %19 = math.exp %18 : vector<8x1xf32>
    %c0_8 = arith.constant 0 : index
    %c0_9 = arith.constant 0 : index
    %20 = vector.load %arg6[%c0_8, %c0_9] : memref<8x1xf32, #tpu.memory_space<vmem>>, vector<8x1xf32>
    %21 = arith.mulf %19, %20 : vector<8x1xf32>
    %22 = vector.broadcast %17 : vector<8x1xf32> to vector<8x5xf32>
    %23 = arith.subf %3, %22 : vector<8x5xf32>
    %24 = math.exp %23 : vector<8x5xf32>
    %cst_10 = arith.constant dense<0.000000e+00> : vector<8xf32>
    %25 = vector.multi_reduction <add>, %24, %cst_10 [1] : vector<8x5xf32> to vector<8xf32>
    %26 = vector.shape_cast %25 : vector<8xf32> to vector<8x1xf32>
    %27 = arith.addf %21, %26 : vector<8x1xf32>
    %c0_11 = arith.constant 0 : index
    %c0_12 = arith.constant 0 : index
    %28 = vector.load %arg6[%c0_11, %c0_12] : memref<8x1xf32, #tpu.memory_space<vmem>>, vector<8x1xf32>
    tpu.vector_store %arg6[%c0_11, %c0_12], %27 {strides = array<i32>} : memref<8x1xf32, #tpu.memory_space<vmem>>, vector<8x1xf32>,
    %c0_13 = arith.constant 0 : index
    %c0_14 = arith.constant 0 : index
    %29 = vector.load %arg7[%c0_13, %c0_14] : memref<8x1xf32, #tpu.memory_space<vmem>>, vector<8x1xf32>
    %30 = arith.mulf %13, %3 : vector<8x5xf32>
    %cst_15 = arith.constant dense<0.000000e+00> : vector<8xf32>
    %31 = vector.multi_reduction <add>, %30, %cst_15 [1] : vector<8x5xf32> to vector<8xf32>
    %32 = vector.shape_cast %31 : vector<8xf32> to vector<8x1xf32>
    %33 = arith.addf %29, %32 : vector<8x1xf32>
    %c0_16 = arith.constant 0 : index
    %c0_17 = arith.constant 0 : index
    %34 = vector.load %arg7[%c0_16, %c0_17] : memref<8x1xf32, #tpu.memory_space<vmem>>, vector<8x1xf32>
    tpu.vector_store %arg7[%c0_16, %c0_17], %33 {strides = array<i32>} : memref<8x1xf32, #tpu.memory_space<vmem>>, vector<8x1xf32>,
    %c0_18 = arith.constant 0 : index
    %c0_19 = arith.constant 0 : index
    %35 = vector.load %arg5[%c0_18, %c0_19] : memref<8x1xf32, #tpu.memory_space<vmem>>, vector<8x1xf32>
    tpu.vector_store %arg5[%c0_18, %c0_19], %17 {strides = array<i32>} : memref<8x1xf32, #tpu.memory_space<vmem>>, vector<8x1xf32>,
    %c0_i32_20 = arith.constant 0 : i32
    %36 = arith.cmpi eq, %arg1, %c0_i32_20 : i32
    %37 = arith.extui %36 : i1 to i32
    %c0_i32_21 = arith.constant 0 : i32
    %38 = arith.cmpi ne, %37, %c0_i32_21 : i32
    scf.if %38 {
      %c0_22 = arith.constant 0 : index
      %c0_23 = arith.constant 0 : index
      %39 = vector.load %arg5[%c0_22, %c0_23] : memref<8x1xf32, #tpu.memory_space<vmem>>, vector<8x1xf32>
      %c0_24 = arith.constant 0 : index
      %c0_25 = arith.constant 0 : index
      %40 = vector.load %arg6[%c0_24, %c0_25] : memref<8x1xf32, #tpu.memory_space<vmem>>, vector<8x1xf32>
      %41 = math.log %40 : vector<8x1xf32>
      %42 = arith.addf %39, %41 : vector<8x1xf32>
      %c0_26 = arith.constant 0 : index
      %c0_27 = arith.constant 0 : index
      %43 = vector.load %arg7[%c0_26, %c0_27] : memref<8x1xf32, #tpu.memory_space<vmem>>, vector<8x1xf32>
      %44 = arith.subf %42, %43 : vector<8x1xf32>
      %c0_28 = arith.constant 0 : index
      %c0_29 = arith.constant 0 : index
      %45 = vector.load %arg4[%c0_28, %c0_29] : memref<8x1xf32, #tpu.memory_space<vmem>>, vector<8x1xf32>
      tpu.vector_store %arg4[%c0_28, %c0_29], %44 {strides = array<i32>} : memref<8x1xf32, #tpu.memory_space<vmem>>, vector<8x1xf32>,
    } else {
    }
    return
  }
  func.func @transform_0(%arg0: i32, %arg1: i32) -> (i32, i32) {
    %c0_i32 = arith.constant 0 : i32
    return %arg0, %arg1 : i32, i32
  }
  func.func @transform_1(%arg0: i32, %arg1: i32) -> (i32, i32) {
    %c0_i32 = arith.constant 0 : i32
    %c0_i32_0 = arith.constant 0 : i32
    return %arg0, %c0_i32 : i32, i32
  }
  func.func @transform_2(%arg0: i32, %arg1: i32) -> (i32, i32) {
    %c0_i32 = arith.constant 0 : i32
    %c0_i32_0 = arith.constant 0 : i32
    return %arg0, %c0_i32 : i32, i32
  }
}

</mosaic_0001>

<bundles_post_ra>
// kernel: tpu_custom_call.1
= control target key start
LH: loop header
LB: loop body
LE: loop exit
PB: predicated region body
PF: predicated region fallthrough
CT: control target
= control target key end

     0   :  { %vm32_vm0 = vcmask 39936   ;;  %vm15_vm1 = vcmask 7168   ;;  %v128_v2 = vmov -inf   ;;  %v129_v3 = vmov 0   ;;  %s166_s0 = inlined_call_operand.vmem [shape: f32[2,5], index: 0, kind: input, shape index: {}]   ;;  %s167_s1 = inlined_call_operand.vmem [shape: s32[2,1], index: 1, kind: input, shape index: {}]   ;;  %s168_s2 = inlined_call_operand.vmem [shape: f32[2,1], index: 2, kind: output, shape index: {}]  }
   0x1   :  { %v19_v0 = vld [vmem:[%s166_s0] sm:$0xff]  ;;  %16 = vst.msk [vmem:[#allocation2] sm:$0xff] %vm15_vm1, %v128_v2  ;;  %120 = vset.pattern.permute.xlu0 %v129_v3  ;;  %121 = vset.pattern.permute.xlu1 %v129_v3  ;;  %v130_v5 = vmov 0.0   ;;  %v22_v13 = vlaneseq  ;;  %v131_v16 = vmov 0.02  }
   0x2   :  { %v33_v1 = vsel %vm32_vm0, %v19_v0, -inf  ;;  %v20_v4 = vld [vmem:[%s167_s1] sm:$0xff]  ;;  %17 = vst.msk [vmem:[#allocation3] sm:$0xff] %vm15_vm1, %v130_v5  ;;  %18 = vst.msk [vmem:[#allocation4] sm:$0xff] %vm15_vm1, %v130_v5 }
   0x3   :  { %34 = vmax.xlane.f32.xlu0 %v33_v1  ;;  %27 = vperm.xlu1 %121, %v20_v4   ;;  %v23_v14 = vand.u32 127, %v22_v13 }
   0x8   :  { %v31_v6 = vld [vmem:[#allocation2] sm:$0xff] }
   0x9   :  { %v40_v24 = vld [vmem:[#allocation3] sm:$0xff]  ;;  %v56_v28 = vld [vmem:[#allocation4] sm:$0xff] }
  0x7e   :  { %v28_v15 = vpop.permute.xlu1 %27 }
  0x7f   :  { %vm29_vm2 = vcmp.eq.s32.totalorder %v23_v14, %v28_v15 }
  0x80   :  { %v30_v17 = vsel %vm29_vm2, 0.92, %v131_v16 }
  0x81   :  { %v57_v18 = vmul.f32 %v30_v17, %v19_v0 }
  0x83   :  { %v58_v21 = vsel %vm32_vm0, %v57_v18, 0.0 }
  0x8c   :  { %v35_v7 = vpop.xlane.xlu0 %34 }
  0x8d   :  { %v36_v8 = vmax.f32 %v31_v6, %v35_v7 }
  0x8f   :  { %v37_v9 = vsub.f32 %v31_v6, %v36_v8  ;;  %63 = vst.msk [vmem:[#allocation2] sm:$0xff] %vm15_vm1, %v36_v8  ;;  %44 = vperm.xlu0 %120, %v36_v8  }
  0x91   :  { %v38_v22 = vmul.f32 1.442695, %v37_v9 }
  0x96   :  { %v67_v34 = vld [vmem:[#allocation2] sm:$0xff] }
 0x10a   :  { %v45_v10 = vpop.permute.xlu0 %44 }
 0x10b   :  { %v47_v11 = vsub.f32 %v19_v0, %v45_v10 }
 0x10d   :  { %v48_v12 = vmul.f32 1.442695, %v47_v11 }
 0x10f   :  { %122 = vpow2.f32 %v48_v12 }
 0x110   :  { %124 = vpow2.f32 %v38_v22 }
 0x11c   :  { %v123_v19 = vpop.eup %122 }
 0x11d   :  { %v50_v20 = vsel %vm32_vm0, %v123_v19, 0.0  ;;  %v125_v23 = vpop.eup %124 }
 0x11e   :  { %51 = vadd.xlane.f32.xlu1 %v50_v20  ;;  %v41_v25 = vmul.f32 %v125_v23, %v40_v24 }
 0x122   :  { %59 = vadd.xlane.f32.xlu1 %v58_v21 }
 0x1a7   :  { %v52_v26 = vpop.xlane.xlu1 %51 }
 0x1a8   :  { %v53_v27 = vadd.f32 %v52_v26, %v41_v25 }
 0x1aa   :  { %55 = vst.msk [vmem:[#allocation3] sm:$0xff] %vm15_vm1, %v53_v27 }
 0x1ab   :  { %v60_v29 = vpop.xlane.xlu1 %59 }
 0x1ac   :  { %v61_v30 = vadd.f32 %v60_v29, %v56_v28 }
 0x1ae   :  { %62 = vst.msk [vmem:[#allocation4] sm:$0xff] %vm15_vm1, %v61_v30 }
 0x1b1   :  { %v68_v31 = vld [vmem:[#allocation3] sm:$0xff] }
 0x1b2   :  { %126 = vlog2.f32 %v68_v31 }
 0x1b5   :  { %v72_v35 = vld [vmem:[#allocation4] sm:$0xff] }
 0x1bf   :  { %v127_v32 = vpop.eup %126 }
 0x1c0   :  { %v70_v33 = vmul.f32 0.6931472, %v127_v32 }
 0x1c2   :  { %v71_v36 = vadd.f32 %v70_v33, %v67_v34 }
 0x1c4   :  { %v73_v37 = vsub.f32 %v71_v36, %v72_v35 }
 0x1c6   :  { %74 = vst.msk [vmem:[#allocation5] sm:$0xff] %vm15_vm1, %v73_v37 }
 0x1cd   :  { %v93_v38 = vld [vmem:[#allocation5] sm:$0x3] }
 0x1ce   :  { %94 = vst [vmem:[%s168_s2] sm:$0x3] %v93_v38 }

</bundles_post_ra>
